<compile_context>
chip_gen: v5e
topology: v5e:2x2
jax: 0.10.0
libtpu: 0.0.40
codegen_flags: <defaults>
</compile_context>

<pallas_src>
import math
import functools

import jax
import jax.numpy as jnp
from jax import lax
from jax.experimental import pallas as pl
from jax.experimental.pallas import tpu as pltpu


# ------------------------- AutoPadding padding math -------------------------
def get_pad_tuple(method, padlr):
    assert padlr >= 0
    if method == 'same':
        left = padlr // 2
        return (left, padlr - left)
    elif method == 'causal':
        return (padlr, 0)
    elif method == 'valid':
        return (0, 0)
    raise ValueError('unknown padding mode: {}'.format(method))


def get_pad_size(size, kernel_size, stride, dilation, method):
    padlr = (int(math.ceil(size / stride)) - 1) * stride \
            + dilation * (kernel_size - 1) + 1 - size
    return get_pad_tuple(method, padlr)


def _round_up(x, m):
    return ((x + m - 1) // m) * m


def _cdiv(a, b):
    return (a + b - 1) // b


# ------------------------------ Pallas kernel --------------------------------
def conv2d_band_kernel(x_ref, w_ref, b_ref, o_ref):
    """One (batch-tile, W-out-tile) block of the banded conv-as-matmul.

    x_ref: (B_tile, H_pad, K_pad)   bf16  lane-dense input window for this W-tile
    w_ref: (KH*K_pad, N_tile)       bf16  banded weights (identical for every tile)
    b_ref: (1, N_tile)              f32   bias tiled over the Tw output positions
    o_ref: (B_tile, H_out, N_tile)  bf16
    """
    B_tile, H_out, N_tile = o_ref.shape
    K_pad = x_ref.shape[-1]
    KH = w_ref.shape[0] // K_pad

    x = x_ref[...]
    # Concatenate the KH H-shifted views along the lane (K) axis and fold the
    # batch dim into M -> a single deep, lane-dense MXU matmul per grid step.
    x_stk = jnp.concatenate([x[:, kh:kh + H_out, :] for kh in range(KH)], axis=-1)
    x_stk = x_stk.reshape(B_tile * H_out, KH * K_pad)
    acc = lax.dot_general(x_stk, w_ref[...],
                          dimension_numbers=(((1,), (0,)), ((), ())),
                          preferred_element_type=jnp.float32)
    acc = acc + b_ref[...]                                  # (1, N_tile) broadcast
    o_ref[...] = acc.reshape(B_tile, H_out, N_tile).astype(o_ref.dtype)


# --------------------------------- wrapper ------------------------------------
def auto_padding_conv2d(x, w_hwio, bias, *, kernel_size, stride, dilation,
                        method='same', mode='reflect', value=0.0):
    """AutoPadding(conv, method, mode, value) forward.  x: (B, C_in, H, W) NCHW."""
    B, C_in, H, W = x.shape
    KH, KW = kernel_size
    assert stride == (1, 1) and dilation == (1, 1), \
        "kernel specialised to stride=1, dilation=1"  # TODO(synk): strided/dilated conv and Conv1d
    C_out = w_hwio.shape[-1]

    # ---- AutoPadding._pad (F.pad ordering: last spatial dim first).  Cast to
    # bf16 BEFORE padding / layout conversion so wrapper passes move half bytes.
    x = x.astype(jnp.bfloat16)
    if method != 'valid':
        pad_h = get_pad_size(H, KH, stride[0], dilation[0], method)
        pad_w = get_pad_size(W, KW, stride[1], dilation[1], method)
        pad_cfg = ((0, 0), (0, 0), pad_h, pad_w)
        if mode in ('zero', 'constant'):
            if mode == 'zero':
                assert value == 0
            x_pad = jnp.pad(x, pad_cfg, mode='constant', constant_values=value)
        elif mode == 'reflect':
            x_pad = jnp.pad(x, pad_cfg, mode='reflect')
        elif mode == 'replicate':
            x_pad = jnp.pad(x, pad_cfg, mode='edge')
        else:
            raise ValueError(mode)
    else:
        x_pad = x
    # TODO(synk): fuse reflect pad + NCHW->lane-dense conversion into the kernel
    # (memory_space=pl.ANY input + per-row DMA with mirrored indices) to drop
    # these wrapper HBM passes entirely.

    H_pad, W_pad = x_pad.shape[2], x_pad.shape[3]
    H_out = H_pad - (KH - 1)
    W_out = W_pad - (KW - 1)

    # ---------------- tiling choices ----------------
    # Output-W (N) tiling: a tile of Tw output positions touches only
    # (Tw+KW-1)*C_in input columns, and the banded weight block is identical
    # for every tile -> single resident weight array, no O(W^2) band.
    N_full = W_out * C_out
    base_tw = 128 // math.gcd(128, C_out)     # smallest Tw with Tw*C_out % 128 == 0
    if N_full <= 512 or base_tw >= W_out:
        Tw, n_wt = W_out, 1
        N_tile = _round_up(N_full, 128)       # lane-dense output (unmasked vst)
    else:
        Tw = base_tw * max(1, 256 // (base_tw * C_out))   # aim ~256 output lanes
        if _cdiv(W_out, Tw) < 2:              # keep >=2 parallel steps (v7x: 2 TCs)
            Tw = base_tw
        n_wt = _cdiv(W_out, Tw)
        N_tile = Tw * C_out

    K_raw = (Tw + KW - 1) * C_in
    K_pad = _round_up(K_raw, 128)             # lane-dense input loads / aligned K push

    # Batch tiling: fold batches into M (target M ~256 rows per MXU push).
    B_tile = max(1, min(B, _cdiv(256, H_out)))
    n_bt = _cdiv(B, B_tile)
    B_padded = n_bt * B_tile
    # TODO(synk): for large H, add an H-tile grid axis with halo blocks so the
    # full (H_pad, K_pad) slab per batch need not be VMEM-resident.

    # ---------------- lane-dense per-tile input windows ----------------
    x_lanes = jnp.transpose(x_pad, (0, 2, 3, 1)).reshape(B, H_pad, W_pad * C_in)
    if n_wt == 1:
        x_tiles = jnp.pad(x_lanes, ((0, 0), (0, 0), (0, K_pad - W_pad * C_in)))
        x_tiles = x_tiles[:, None]                               # (B, 1, H_pad, K_pad)
    else:
        col = (jnp.arange(n_wt, dtype=jnp.int32)[:, None] * (Tw * C_in)
               + jnp.arange(K_raw, dtype=jnp.int32)[None, :])    # (n_wt, K_raw)
        valid = col < W_pad * C_in
        gath = jnp.take(x_lanes, jnp.clip(col, 0, W_pad * C_in - 1), axis=2)
        gath = jnp.where(valid[None, None], gath, 0)             # (B, H_pad, n_wt, K_raw)
        x_tiles = jnp.transpose(gath, (0, 2, 1, 3))              # (B, n_wt, H_pad, K_raw)
        x_tiles = jnp.pad(x_tiles, ((0, 0), (0, 0), (0, 0), (0, K_pad - K_raw)))
    if B_padded > B:
        x_tiles = jnp.pad(x_tiles, ((0, B_padded - B), (0, 0), (0, 0), (0, 0)))
    x_tiles = x_tiles.astype(jnp.bfloat16)

    # ---------------- tile-invariant banded weights + bias ----------------
    # band[kh, (wo+kw)*C_in + ci, wo*C_out + co] = w[kh, kw, ci, co]
    # Built with one vectorised gather (no W_out-long dynamic-update-slice chain).
    wi = jnp.arange(Tw + KW - 1)
    wo = jnp.arange(Tw)
    kw_idx = wi[:, None] - wo[None, :]                           # (Tw+KW-1, Tw)
    valid_kw = (kw_idx >= 0) & (kw_idx < KW)
    g = w_hwio.astype(jnp.float32)[:, jnp.clip(kw_idx, 0, KW - 1)]   # (KH, WI, Tw, C_in, C_out)
    g = jnp.where(valid_kw[None, :, :, None, None], g, 0.0)
    g = jnp.transpose(g, (0, 1, 3, 2, 4)).reshape(KH, K_raw, Tw * C_out)
    band = jnp.pad(g, ((0, 0), (0, K_pad - K_raw), (0, N_tile - Tw * C_out)))
    band = band.reshape(KH * K_pad, N_tile).astype(jnp.bfloat16)

    bias_band = jnp.pad(jnp.tile(bias.astype(jnp.float32), Tw)[None, :],
                        ((0, 0), (0, N_tile - Tw * C_out)))

    # ---------------- VMEM budget (v7x: 64 MiB physical / 32 MiB scoped) ----
    x_blk = B_tile * H_pad * K_pad * 2
    o_blk = B_tile * H_out * N_tile * 2
    needed = 2 * (x_blk + o_blk) + band.size * 2 + bias_band.size * 4
    vmem_limit = int(min(max(2 * needed + (4 << 20), 16 << 20), 56 << 20))

    out = pl.pallas_call(
        conv2d_band_kernel,
        out_shape=jax.ShapeDtypeStruct((B_padded, n_wt, H_out, N_tile), jnp.bfloat16),
        grid=(n_bt, n_wt),
        in_specs=[
            pl.BlockSpec((B_tile, None, H_pad, K_pad), lambda i, j: (i, j, 0, 0)),
            pl.BlockSpec((KH * K_pad, N_tile), lambda i, j: (0, 0)),   # resident weights
            pl.BlockSpec((1, N_tile), lambda i, j: (0, 0)),            # resident bias
        ],
        out_specs=pl.BlockSpec((B_tile, None, H_out, N_tile), lambda i, j: (i, j, 0, 0)),
        compiler_params=pltpu.CompilerParams(
            dimension_semantics=("parallel", "parallel"),
            vmem_limit_bytes=vmem_limit),
    )(x_tiles, band, bias_band)

    # ---------------- back to NCHW ----------------
    # TODO(synk): let the consumer take NHWC / bf16 directly to drop this pass.
    out = out[:B]                                                # drop batch padding
    out = jnp.transpose(out, (0, 2, 1, 3))[..., :Tw * C_out]     # (B, H_out, n_wt, Tw*C_out)
    out = out.reshape(B, H_out, n_wt * Tw, C_out)[:, :, :W_out, :]
    return jnp.transpose(out, (0, 3, 1, 2))                      # (B, C_out, H_out, W_out)


# --------------------------------- reference -----------------------------------
def reference_conv(x_f32, w_hwio, bias, k, method='same', mode='reflect'):
    H, W = x_f32.shape[2], x_f32.shape[3]
    pad_h = get_pad_size(H, k, 1, 1, method)
    pad_w = get_pad_size(W, k, 1, 1, method)
    xp = jnp.pad(x_f32, ((0, 0), (0, 0), pad_h, pad_w), mode='reflect')
    w_oihw = jnp.transpose(w_hwio, (3, 2, 0, 1))
    r = lax.conv_general_dilated(xp, w_oihw, (1, 1), 'VALID',
                                 dimension_numbers=('NCHW', 'OIHW', 'NCHW'))
    return r + bias[None, :, None, None]


# ----------------------------------- main --------------------------------------
if __name__ == "__main__":
    key = jax.random.PRNGKey(0)

    conv_fn = jax.jit(functools.partial(
        auto_padding_conv2d, kernel_size=(3, 3), stride=(1, 1), dilation=(1, 1),
        method='same', mode='reflect'))

    # First config = module-sized shapes (single W-tile path, grid=(1,1));
    # second exercises the W-out tiling path (grid=(1,3), 3 parallel steps).
    for (B, C_in, H, W, C_out) in [(2, 4, 16, 16, 8), (2, 4, 16, 48, 16)]:
        key, k1, k2, k3 = jax.random.split(key, 4)
        K = 3
        fan_in = C_in * K * K
        x = jax.random.normal(k1, (B, C_in, H, W), dtype=jnp.float32)
        w_hwio = jax.random.normal(k2, (K, K, C_in, C_out), dtype=jnp.float32) / math.sqrt(fan_in)
        bias = jax.random.normal(k3, (C_out,), dtype=jnp.float32) * 0.01

        out = jax.block_until_ready(conv_fn(x, w_hwio, bias)).astype(jnp.float32)
        assert out.shape == (B, C_out, H, W), out.shape

        # Tight check vs a reference with matching bf16 quantisation of x/w/out.
        x_q = x.astype(jnp.bfloat16).astype(jnp.float32)
        w_q = w_hwio.astype(jnp.bfloat16).astype(jnp.float32)
        ref_q = reference_conv(x_q, w_q, bias, K).astype(jnp.bfloat16).astype(jnp.float32)
        assert bool(jnp.allclose(out, ref_q, atol=5e-2, rtol=5e-2)), \
            float(jnp.max(jnp.abs(out - ref_q)))

        # Looser check vs the true f32 module semantics (bf16 MXU approximation).
        ref = reference_conv(x, w_hwio, bias, K)
        assert bool(jnp.allclose(out, ref, atol=1e-1, rtol=1e-1)), \
            float(jnp.max(jnp.abs(out - ref)))

    print("KERNEL_OK")
</pallas_src>

<mosaic_0001>
module attributes {stable_mosaic.version = 11 : i64} {
  func.func @conv2d_band_kernel(%arg0: i32, %arg1: i32, %arg2: memref<2x1x18x128xbf16, #tpu.memory_space<vmem>>, %arg3: memref<384x128xbf16, #tpu.memory_space<vmem>>, %arg4: memref<1x128xf32, #tpu.memory_space<vmem>>, %arg5: memref<2x1x16x128xbf16, #tpu.memory_space<vmem>>) attributes {dimension_semantics = [#tpu.dimension_semantics<parallel>, #tpu.dimension_semantics<parallel>], iteration_bounds = array<i64: 1, 1>, scalar_prefetch = 0 : i64, scratch_operands = 0 : i64, tpu.core_type = #tpu.core_type<tc>, window_params = [{transform_indices = @transform_0, window_bounds = array<i64: 2, 1, 18, 128>}, {pipeline_mode = #tpu.pipeline_mode<synchronous>, transform_indices = @transform_1, window_bounds = array<i64: 384, 128>}, {pipeline_mode = #tpu.pipeline_mode<synchronous>, transform_indices = @transform_2, window_bounds = array<i64: 1, 128>}, {transform_indices = @transform_3, window_bounds = array<i64: 2, 1, 16, 128>}]} {
    %c0 = arith.constant 0 : index
    %c0_0 = arith.constant 0 : index
    %c0_1 = arith.constant 0 : index
    %c0_2 = arith.constant 0 : index
    %0 = vector.load %arg2[%c0, %c0_0, %c0_1, %c0_2] : memref<2x1x18x128xbf16, #tpu.memory_space<vmem>>, vector<2x1x18x128xbf16>
    %1 = vector.shape_cast %0 : vector<2x1x18x128xbf16> to vector<2x18x128xbf16>
    %2 = vector.extract_strided_slice %1 {offsets = [0, 0, 0], sizes = [2, 16, 128], strides = [1, 1, 1]} : vector<2x18x128xbf16> to vector<2x16x128xbf16>
    %3 = vector.extract_strided_slice %1 {offsets = [0, 1, 0], sizes = [2, 16, 128], strides = [1, 1, 1]} : vector<2x18x128xbf16> to vector<2x16x128xbf16>
    %4 = vector.extract_strided_slice %1 {offsets = [0, 2, 0], sizes = [2, 16, 128], strides = [1, 1, 1]} : vector<2x18x128xbf16> to vector<2x16x128xbf16>
    %5 = tpu.concatenate %2, %3, %4 in 2 : vector<2x16x128xbf16>, vector<2x16x128xbf16>, vector<2x16x128xbf16> -> vector<2x16x384xbf16>
    %6 = vector.shape_cast %5 : vector<2x16x384xbf16> to vector<32x384xbf16>
    %c0_3 = arith.constant 0 : index
    %c0_4 = arith.constant 0 : index
    %7 = vector.load %arg3[%c0_3, %c0_4] : memref<384x128xbf16, #tpu.memory_space<vmem>>, vector<384x128xbf16>
    %cst = arith.constant dense<0.000000e+00> : vector<32x128xf32>
    %8 = tpu.matmul %6, %7, %cst {dimension_numbers = #tpu.dot_dimension_numbers<[1], [0], [0], [1], [0, 0, 1, 1], [], []>} : vector<32x384xbf16>, vector<384x128xbf16>, vector<32x128xf32> -> vector<32x128xf32>
    %c0_5 = arith.constant 0 : index
    %c0_6 = arith.constant 0 : index
    %9 = vector.load %arg4[%c0_5, %c0_6] : memref<1x128xf32, #tpu.memory_space<vmem>>, vector<1x128xf32>
    %10 = vector.broadcast %9 : vector<1x128xf32> to vector<32x128xf32>
    %11 = arith.addf %8, %10 : vector<32x128xf32>
    %12 = vector.shape_cast %11 : vector<32x128xf32> to vector<2x16x128xf32>
    %13 = arith.truncf %12 : vector<2x16x128xf32> to vector<2x16x128xbf16>
    %c0_7 = arith.constant 0 : index
    %c0_8 = arith.constant 0 : index
    %c0_9 = arith.constant 0 : index
    %c0_10 = arith.constant 0 : index
    %14 = vector.load %arg5[%c0_7, %c0_8, %c0_9, %c0_10] : memref<2x1x16x128xbf16, #tpu.memory_space<vmem>>, vector<2x1x16x128xbf16>
    %15 = vector.shape_cast %14 : vector<2x1x16x128xbf16> to vector<2x16x128xbf16>
    %16 = vector.shape_cast %13 : vector<2x16x128xbf16> to vector<2x1x16x128xbf16>
    tpu.vector_store %arg5[%c0_7, %c0_8, %c0_9, %c0_10], %16 {strides = array<i32>} : memref<2x1x16x128xbf16, #tpu.memory_space<vmem>>, vector<2x1x16x128xbf16>,
    return
  }
  func.func @transform_0(%arg0: i32, %arg1: i32) -> (i32, i32, i32, i32) {
    %c0_i32 = arith.constant 0 : i32
    %c0_i32_0 = arith.constant 0 : i32
    %c0_i32_1 = arith.constant 0 : i32
    return %arg0, %arg1, %c0_i32, %c0_i32_0 : i32, i32, i32, i32
  }
  func.func @transform_1(%arg0: i32, %arg1: i32) -> (i32, i32) {
    %c0_i32 = arith.constant 0 : i32
    %c0_i32_0 = arith.constant 0 : i32
    %c0_i32_1 = arith.constant 0 : i32
    return %c0_i32, %c0_i32_0 : i32, i32
  }
  func.func @transform_2(%arg0: i32, %arg1: i32) -> (i32, i32) {
    %c0_i32 = arith.constant 0 : i32
    %c0_i32_0 = arith.constant 0 : i32
    %c0_i32_1 = arith.constant 0 : i32
    return %c0_i32, %c0_i32_0 : i32, i32
  }
  func.func @transform_3(%arg0: i32, %arg1: i32) -> (i32, i32, i32, i32) {
    %c0_i32 = arith.constant 0 : i32
    %c0_i32_0 = arith.constant 0 : i32
    %c0_i32_1 = arith.constant 0 : i32
    return %arg0, %arg1, %c0_i32, %c0_i32_0 : i32, i32, i32, i32
  }
}

</mosaic_0001>

<bundles_post_ra>
// kernel: tile.8
= control target key start
LH: loop header
LB: loop body
LE: loop exit
PB: predicated region body
PF: predicated region fallthrough
CT: control target
= control target key end

     0   :  { %s28_s0 = inlined_call_operand.vmem [shape: f32[8], index: 0, kind: input, shape index: {}]   ;;  %s29_s1 = inlined_call_operand.vmem [shape: f32[16,8], index: 1, kind: output, shape index: {}]  }
   0x1   :  { %v4_v0 = vld [vmem:[%s28_s0] ss:$0 sm:$0xff] }
   0x2   :  { %5 = vst [vmem:[%s29_s1] sm:$0xff] %v4_v0 }
   0x3   :  { %8 = vst [vmem:[%s29_s1 + $0x8] sm:$0xff] %v4_v0 }

// kernel: tile.9
= control target key start
LH: loop header
LB: loop body
LE: loop exit
PB: predicated region body
PF: predicated region fallthrough
CT: control target
= control target key end

     0   :  { %s131_s10 = smov 120   ;;  %s132_s11 = smov 104   ;;  %vm3_vm0 = vcmask 64512   ;;  %vm9_vm1 = vcmask 1048512   ;;  %vm15_vm2 = vcmask 982912   ;;  %vm21_vm3 = vcmask 917312   ;;  %s207_s0 = inlined_call_operand.vmem [shape: f32[16,8], index: 0, kind: input, shape index: {}]   ;;  %s208_s1 = inlined_call_operand.vmem [shape: f32[1,128], index: 1, kind: output, shape index: {}]  }
   0x1   :  { %v101_v0 = vld [vmem:[%s207_s0 + $0xf] sm:$0x1]   ;;  %v103_v1 = vld [vmem:[%s207_s0 + $0xd] sm:$0x1]   ;;  %v105_v2 = vld [vmem:[%s207_s0 + $0xb] sm:$0x1]  }
   0x2   :  { %7 = vrot.lane.b32.xlu0 %v101_v0, %s131_s10  ;;  %19 = vrot.lane.b32.xlu1 %v103_v1, %s132_s11  ;;  %s133_s14 = smov 88   ;;  %v102_v3 = vld [vmem:[%s207_s0 + $0xe] sm:$0x1]   ;;  %v104_v4 = vld [vmem:[%s207_s0 + $0xc] sm:$0x1]   ;;  %s134_s19 = smov 112  }
   0x3   :  { %31 = vrot.lane.b32.xlu2 %v105_v2, %s133_s14  ;;  %s135_s20 = smov 96   ;;  %v106_v5 = vld [vmem:[%s207_s0 + $0xa] sm:$0x1]   ;;  %s136_s23 = smov 80   ;;  %v107_v6 = vld [vmem:[%s207_s0 + $0x9] sm:$0x1]  }
   0x4   :  { %v108_v7 = vld [vmem:[%s207_s0 + $0x8] sm:$0x1]   ;;  %s137_s28 = smov 72   ;;  %s138_s29 = smov 64   ;;  %v109_v8 = vld [vmem:[%s207_s0 + $0x7] sm:$0x1]  }
   0x5   :  { %s139_s3 = smov 56   ;;  %v110_v9 = vld [vmem:[%s207_s0 + $0x6] sm:$0x1]   ;;  %v111_v10 = vld [vmem:[%s207_s0 + $0x5] sm:$0x1]   ;;  %s140_s8 = smov 48  }
   0x6   :  { %s141_s9 = smov 40   ;;  %v112_v11 = vld [vmem:[%s207_s0 + $0x4] sm:$0x1]   ;;  %s142_s12 = smov 32   ;;  %v113_v12 = vld [vmem:[%s207_s0 + $0x3] sm:$0x1]  }
   0x7   :  { %v114_v13 = vld [vmem:[%s207_s0 + $0x2] sm:$0x1]   ;;  %s143_s17 = smov 24   ;;  %s144_s18 = smov 16   ;;  %v115_v14 = vld [vmem:[%s207_s0 + $0x1] sm:$0x1]  }
   0x8   :  { %s145_s21 = smov 8   ;;  %v2_v15 = vld [vmem:[%s207_s0] sm:$0x1]   ;;  %vm27_vm4 = vcmask 851712   ;;  %vm33_vm5 = vcmask 786112   ;;  %vm39_vm6 = vcmask 720512  }
   0x9   :  { %4 = vst.msk [vmem:[#allocation0] sm:$0x1] %vm3_vm0, %v2_v15   ;;  %vm45_vm7 = vcmask 654912   ;;  %vm51_vm8 = vcmask 589312   ;;  %vm57_vm9 = vcmask 523712   ;;  %vm63_vm10 = vcmask 458112  }
   0xa   :  { %13 = vrot.lane.b32.xlu0 %v102_v3, %s134_s19  ;;  %25 = vrot.lane.b32.xlu1 %v104_v4, %s135_s20  ;;  %vm69_vm11 = vcmask 392512   ;;  %vm75_vm12 = vcmask 326912   ;;  %vm81_vm13 = vcmask 261312   ;;  %vm87_vm14 = vcmask 195712  }
   0xb   :  { %37 = vrot.lane.b32.xlu2 %v106_v5, %s136_s23  ;;  %vm93_vm15 = vcmask 130112  }
  0x12   :  { %43 = vrot.lane.b32.xlu0 %v107_v6, %s137_s28  ;;  %49 = vrot.lane.b32.xlu1 %v108_v7, %s138_s29 }
  0x13   :  { %55 = vrot.lane.b32.xlu2 %v109_v8, %s139_s3 }
  0x1a   :  { %61 = vrot.lane.b32.xlu0 %v110_v9, %s140_s8  ;;  %67 = vrot.lane.b32.xlu1 %v111_v10, %s141_s9 }
  0x1b   :  { %73 = vrot.lane.b32.xlu2 %v112_v11, %s142_s12 }
  0x22   :  { %79 = vrot.lane.b32.xlu0 %v113_v12, %s143_s17  ;;  %85 = vrot.lane.b32.xlu1 %v114_v13, %s144_s18 }
  0x23   :  { %91 = vrot.lane.b32.xlu2 %v115_v14, %s145_s21 }
  0x5d   :  { %v32_v16 = vpop.permute.xlu2 %31  }
  0x65   :  { %v38_v17 = vpop.permute.xlu2 %37  }
  0x6d   :  { %v56_v18 = vpop.permute.xlu2 %55  }
  0x74   :  { %v8_v19 = vpop.permute.xlu0 %7   ;;  %v20_v20 = vpop.permute.xlu1 %19  }
  0x75   :  { %10 = vst.msk [vmem:[#allocation0] sm:$0x1] %vm9_vm1, %v8_v19   ;;  %v74_v21 = vpop.permute.xlu2 %73  }
  0x7c   :  { %v14_v22 = vpop.permute.xlu0 %13   ;;  %v26_v23 = vpop.permute.xlu1 %25  }
  0x7d   :  { %16 = vst.msk [vmem:[#allocation0] sm:$0x1] %vm15_vm2, %v14_v22   ;;  %v92_v24 = vpop.permute.xlu2 %91  }
  0x7e   :  { %22 = vst.msk [vmem:[#allocation0] sm:$0x1] %vm21_vm3, %v20_v20  }
  0x7f   :  { %28 = vst.msk [vmem:[#allocation0] sm:$0x1] %vm27_vm4, %v26_v23  }
  0x80   :  { %34 = vst.msk [vmem:[#allocation0] sm:$0x1] %vm33_vm5, %v32_v16  }
  0x81   :  { %40 = vst.msk [vmem:[#allocation0] sm:$0x1] %vm39_vm6, %v38_v17  }
  0x84   :  { %v44_v25 = vpop.permute.xlu0 %43   ;;  %v50_v26 = vpop.permute.xlu1 %49  }
  0x85   :  { %46 = vst.msk [vmem:[#allocation0] sm:$0x1] %vm45_vm7, %v44_v25  }
  0x86   :  { %52 = vst.msk [vmem:[#allocation0] sm:$0x1] %vm51_vm8, %v50_v26  }
  0x87   :  { %58 = vst.msk [vmem:[#allocation0] sm:$0x1] %vm57_vm9, %v56_v18  }
  0x8c   :  { %v62_v27 = vpop.permute.xlu0 %61   ;;  %v68_v28 = vpop.permute.xlu1 %67  }
  0x8d   :  { %64 = vst.msk [vmem:[#allocation0] sm:$0x1] %vm63_vm10, %v62_v27  }
  0x8e   :  { %70 = vst.msk [vmem:[#allocation0] sm:$0x1] %vm69_vm11, %v68_v28  }
  0x8f   :  { %76 = vst.msk [vmem:[#allocation0] sm:$0x1] %vm75_vm12, %v74_v21  }
  0x94   :  { %v80_v29 = vpop.permute.xlu0 %79   ;;  %v86_v30 = vpop.permute.xlu1 %85  }
  0x95   :  { %82 = vst.msk [vmem:[#allocation0] sm:$0x1] %vm81_vm13, %v80_v29  }
  0x96   :  { %88 = vst.msk [vmem:[#allocation0] sm:$0x1] %vm87_vm14, %v86_v30  }
  0x97   :  { %94 = vst.msk [vmem:[#allocation0] sm:$0x1] %vm93_vm15, %v92_v24  }
  0x9e   :  { %v97_v31 = vld [vmem:[#allocation0] sm:$0x1] }
  0x9f   :  { %100 = vst [vmem:[%s208_s1] sm:$0x1] %v97_v31 }

// kernel: auto_padding_conv2d.1
= control target key start
LH: loop header
LB: loop body
LE: loop exit
PB: predicated region body
PF: predicated region fallthrough
CT: control target
= control target key end

     0   :  { %vm38_vm0 = vsmask.f32 7424  ;;  %vm65_vm1 = vcmask 1046528   ;;  %s606_s1 = inlined_call_operand.vmem [shape: bf16[384,128], index: 1, kind: input, shape index: {}]   ;;  %s607_s0 = inlined_call_operand.vmem [shape: bf16[2,1,18,128], index: 0, kind: input, shape index: {}]   ;;  %s608_s2 = inlined_call_operand.vmem [shape: f32[1,128], index: 2, kind: input, shape index: {}]   ;;  %s609_s3 = inlined_call_operand.vmem [shape: bf16[2,1,16,128], index: 3, kind: output, shape index: {}]  }
   0x1   :  { %v452_v0 = vld [vmem:[%s606_s1 + $0x38] sm:$0xff]  ;;  %v451_v3 = vld [vmem:[%s606_s1 + $0x30] sm:$0xff]  ;;  %v450_v6 = vld [vmem:[%s606_s1 + $0x28] sm:$0xff] }
   0x2   :  { %v460_v1 = vld [vmem:[%s606_s1 + $0x78] sm:$0xff]  ;;  %270 = vmatpush.bf16.msra.mxu0 %v452_v0  ;;  %v459_v4 = vld [vmem:[%s606_s1 + $0x70] sm:$0xff]  ;;  %480 = vmatpush.bf16.msra.mxu3 %v452_v0  ;;  %v458_v7 = vld [vmem:[%s606_s1 + $0x68] sm:$0xff] }
   0x3   :  { %v468_v2 = vld [vmem:[%s606_s1 + $0xb8] sm:$0xff]  ;;  %289 = vmatpush.bf16.msra.mxu1 %v460_v1  ;;  %v467_v5 = vld [vmem:[%s606_s1 + $0xb0] sm:$0xff]  ;;  %v466_v8 = vld [vmem:[%s606_s1 + $0xa8] sm:$0xff] }
   0x4   :  { %308 = vmatpush.bf16.msra.mxu2 %v468_v2  ;;  %v449_v9 = vld [vmem:[%s606_s1 + $0x20] sm:$0xff]  ;;  %v16_v12 = vld [vmem:[%s607_s0 + $0x8] sm:$0x1]  ;;  %v448_v13 = vld [vmem:[%s606_s1 + $0x18] sm:$0xff] }
   0x5   :  { %v457_v10 = vld [vmem:[%s606_s1 + $0x60] sm:$0xff]  ;;  %v456_v14 = vld [vmem:[%s606_s1 + $0x58] sm:$0xff]  ;;  %v34_v16 = vunpack.c.l.b16 %v16_v12  ;;  %v447_v18 = vld [vmem:[%s606_s1 + $0x10] sm:$0xff] }
   0x6   :  { %271 = vmatpush.bf16.msra.mxu0 %v451_v3  ;;  %481 = vmatpush.bf16.msra.mxu3 %v451_v3  ;;  %v465_v11 = vld [vmem:[%s606_s1 + $0xa0] sm:$0xff]  ;;  %v464_v17 = vld [vmem:[%s606_s1 + $0x98] sm:$0xff]  ;;  %v455_v19 = vld [vmem:[%s606_s1 + $0x50] sm:$0xff] }
   0x7   :  { %290 = vmatpush.bf16.msra.mxu1 %v459_v4  ;;  %v443_v15 = vld [vmem:[%s607_s0] sm:$0xff]  ;;  %v36_v20 = vpack.c.b16 %v34_v16, %v34_v16  ;;  %v463_v22 = vld [vmem:[%s606_s1 + $0x90] sm:$0xff]  ;;  %v446_v23 = vld [vmem:[%s606_s1 + $0x8] sm:$0xff] }
   0x8   :  { %309 = vmatpush.bf16.msra.mxu2 %v467_v5  ;;  %v42_v21 = vshll.u32 %v443_v15, 16  ;;  %v454_v24 = vld [vmem:[%s606_s1 + $0x48] sm:$0xff]  ;;  %v40_v25 = vshrl.u32 %v443_v15, 16  ;;  %v445_v29 = vld [vmem:[%s606_s1] sm:$0xff]  ;;  %v66_v34 = vrot.slane %v443_v15, 1 }
   0x9   :  { %v47_v27 = vshll.u32 %v36_v20, 16  ;;  %v462_v28 = vld [vmem:[%s606_s1 + $0x88] sm:$0xff]  ;;  %v453_v30 = vld [vmem:[%s606_s1 + $0x40] sm:$0xff]  ;;  %v67_v35 = vrot.slane %v36_v20, 1  ;;  %v19_v36 = vld [vmem:[%s607_s0 + $0x14] sm:$0x1] }
   0xa   :  { %272 = vmatpush.bf16.msra.mxu0 %v450_v6  ;;  %482 = vmatpush.bf16.msra.mxu3 %v450_v6  ;;  %v44_v26 = vrot.slane %v42_v21, 1  ;;  %v461_v33 = vld [vmem:[%s606_s1 + $0x80] sm:$0xff]  ;;  %v444_v38 = vld [vmem:[%s607_s0 + $0xc] sm:$0xff]  ;;  %v35_v39 = vunpack.c.l.b16 %v19_v36 }
   0xb   :  { %291 = vmatpush.bf16.msra.mxu1 %v458_v7  ;;  %v49_v32 = vrot.slane %v47_v27, 1  ;;  %v68_v40 = vsel %vm65_vm1, %v66_v34, %v67_v35  ;;  %v54_v42 = vshll.u32 %v444_v38, 16  ;;  %v52_v43 = vshrl.u32 %v444_v38, 16  ;;  %v488_v54 = vld [vmem:[%s608_s2] ss:$0 sm:$0xff] }
   0xc   :  { %310 = vmatpush.bf16.msra.mxu2 %v466_v8  ;;  %v45_v31 = vor.u32 %v44_v26, %v40_v25  ;;  %v37_v41 = vpack.c.b16 %v35_v39, %v35_v39  ;;  %v69_v48 = vrot.slane %v444_v38, 1 }
   0xd   :  { %v56_v44 = vrot.slane %v54_v42, 1 }
   0xe   :  { %273 = vmatpush.bf16.msra.mxu0 %v449_v9  ;;  %483 = vmatpush.bf16.msra.mxu3 %v449_v9  ;;  %v50_v37 = vsel %vm38_vm0, %v45_v31, %v49_v32  ;;  %v59_v45 = vshll.u32 %v37_v41, 16  ;;  %v70_v49 = vrot.slane %v37_v41, 1 }
   0xf   :  { %292 = vmatpush.bf16.msra.mxu1 %v457_v10  ;;  %v57_v46 = vor.u32 %v56_v44, %v52_v43 }
  0x10   :  { %311 = vmatpush.bf16.msra.mxu2 %v465_v11  ;;  %v61_v47 = vrot.slane %v59_v45, 1  ;;  %v71_v51 = vsel %vm65_vm1, %v69_v48, %v70_v49 }
  0x12   :  { %274 = vmatpush.bf16.msra.mxu0 %v448_v13  ;;  %484 = vmatpush.bf16.msra.mxu3 %v448_v13  ;;  %v62_v50 = vsel %vm38_vm0, %v57_v46, %v61_v47 }
  0x13   :  { %293 = vmatpush.bf16.msra.mxu1 %v456_v14 }
  0x14   :  { %312 = vmatpush.bf16.msra.mxu2 %v464_v17 }
  0x16   :  { %275 = vmatpush.bf16.msra.mxu0 %v447_v18  ;;  %485 = vmatpush.bf16.msra.mxu3 %v447_v18 }
  0x17   :  { %294 = vmatpush.bf16.msra.mxu1 %v455_v19 }
  0x18   :  { %313 = vmatpush.bf16.msra.mxu2 %v463_v22 }
  0x1a   :  { %276 = vmatpush.bf16.msra.mxu0 %v446_v23  ;;  %486 = vmatpush.bf16.msra.mxu3 %v446_v23 }
  0x1b   :  { %295 = vmatpush.bf16.msra.mxu1 %v454_v24 }
  0x1c   :  { %314 = vmatpush.bf16.msra.mxu2 %v462_v28 }
  0x1e   :  { %277 = vmatpush.bf16.msra.mxu0 %v445_v29  ;;  %487 = vmatpush.bf16.msra.mxu3 %v445_v29 }
  0x1f   :  { %296 = vmatpush.bf16.msra.mxu1 %v453_v30 }
  0x20   :  { %315 = vmatpush.bf16.msra.mxu2 %v461_v33 }
  0x21   :  { %278 = vmatmul.bf16.vlgmr.msra.gmra.mxu0 %v443_v15  ;;  %283 = vmatmul.bf16.vlgmr.msra.gmra.mxu3 %v444_v38 }
  0x22   :  { %297 = vmatmul.bf16.vlgmr.msra.gmra.mxu1 %v50_v37 }
  0x23   :  { %316 = vmatmul.bf16.vlgmr.msra.gmra.mxu2 %v68_v40 }
  0x32   :  { %302 = vmatmul.bf16.gmra.mxu1 %v62_v50 }
  0x33   :  { %321 = vmatmul.bf16.gmra.mxu2 %v71_v51 }
  0x9e   :  { %v279_v52 = vpop.f32.mrf.mxu0 }
  0x9f   :  { %v298_v53 = vpop.f32.mrf.mxu1  ;;  %v280_v56 = vadd.f32 %v488_v54, %v279_v52 }
  0xa1   :  { %v299_v60 = vadd.f32 %v298_v53, %v280_v56 }
  0xa4   :  { %v284_v62 = vpop.f32.mrf.mxu3 }
  0xa5   :  { %v285_v5 = vadd.f32 %v488_v54, %v284_v62 }
  0xa6   :  { %v317_v55 = vpop.f32.mrf.mxu2  ;;  %v281_v57 = vpop.f32.mrf.mxu0 }
  0xa7   :  { %v300_v58 = vpop.f32.mrf.mxu1  ;;  %v282_v59 = vadd.f32 %v488_v54, %v281_v57  ;;  %v318_v0 = vadd.f32 %v317_v55, %v299_v60 }
  0xa9   :  { %v301_v61 = vadd.f32 %v300_v58, %v282_v59 }
  0xac   :  { %v286_v6 = vpop.f32.mrf.mxu3 }
  0xad   :  { %v287_v9 = vadd.f32 %v488_v54, %v286_v6 }
  0xae   :  { %v319_v63 = vpop.f32.mrf.mxu2 }
  0xaf   :  { %v320_v1 = vadd.f32 %v319_v63, %v301_v61  ;;  %v303_v2 = vpop.f32.mrf.mxu1 }
  0xb0   :  { %v304_v8 = vadd.f32 %v303_v2, %v285_v5 }
  0xb1   :  { %v472_v3 = vpack.c.bf16 %v320_v1, %v318_v0 }
  0xb3   :  { %473 = vst [vmem:[%s609_s3] sm:$0xff] %v472_v3  }
  0xb6   :  { %v322_v4 = vpop.f32.mrf.mxu2 }
  0xb7   :  { %v305_v7 = vpop.f32.mrf.mxu1  ;;  %v323_v12 = vadd.f32 %v322_v4, %v304_v8 }
  0xb8   :  { %v306_v10 = vadd.f32 %v305_v7, %v287_v9 }
  0xbe   :  { %v324_v11 = vpop.f32.mrf.mxu2 }
  0xbf   :  { %v325_v13 = vadd.f32 %v324_v11, %v306_v10 }
  0xc1   :  { %v477_v14 = vpack.c.bf16 %v325_v13, %v323_v12 }
  0xc3   :  { %479 = vst [vmem:[%s609_s3 + $0x8] sm:$0xff] %v477_v14  }

</bundles_post_ra>
